<compile_context>
chip_gen: v5e
topology: v5e:2x2
jax: 0.10.0
libtpu: 0.0.40
codegen_flags: <defaults>
</compile_context>

<pallas_src>
import functools
import math

import jax
import jax.numpy as jnp
from jax.experimental import pallas as pl
from jax.experimental.pallas import tpu as pltpu


def _round_up(x, m):
    return (x + m - 1) // m * m


def _smooth_ce_kernel(logits_ref, picked_ref, out_ref,
                      m_ref, l_ref, sx_ref,
                      *, smoothing, vocab, tv):
    """One (tm, tv) vocab chunk of one row tile.

    logits_ref: (tm, tv) input dtype     picked_ref: (tm, 1) f32 (target logit)
    out_ref:    (tm, 2) f32 [loss | nll] scratch: three (tm, 1) f32 accumulators
    """
    k = pl.program_id(1)
    nk = pl.num_programs(1)

    # --- init accumulators at the first vocab chunk of this row tile ----------
    @pl.when(k == 0)
    def _():
        m_ref[...] = jnp.full(m_ref.shape, -jnp.inf, jnp.float32)
        l_ref[...] = jnp.zeros(l_ref.shape, jnp.float32)
        sx_ref[...] = jnp.zeros(sx_ref.shape, jnp.float32)

    x = logits_ref[...].astype(jnp.float32)                       # (tm, tv) f32

    def accumulate(x_exp, x_sum):
        # Online log-sum-exp update + running sum(x).
        m_prev = m_ref[...]
        m_new = jnp.maximum(m_prev, jnp.max(x_exp, axis=-1, keepdims=True))
        alpha = jnp.exp(m_prev - m_new)
        p = jnp.exp(x_exp - m_new)                                # exp(-inf) -> 0
        l_ref[...] = alpha * l_ref[...] + jnp.sum(p, axis=-1, keepdims=True)
        sx_ref[...] = sx_ref[...] + jnp.sum(x_sum, axis=-1, keepdims=True)
        m_ref[...] = m_new

    def finalize():
        lse = m_ref[...] + jnp.log(l_ref[...])                    # (tm, 1)
        nll = lse - picked_ref[...]                               # -log_softmax[tgt]
        smooth = float(vocab) * lse - sx_ref[...]                 # -sum(log_softmax)
        loss = (1.0 - smoothing) * nll + (smoothing / vocab) * smooth
        # Single fused store: column 0 = loss, column 1 = nll.
        col2 = jax.lax.broadcasted_iota(jnp.int32, out_ref.shape, 1)
        out_ref[...] = jnp.where(col2 == 0, loss, nll).astype(out_ref.dtype)

    need_mask = (vocab % tv) != 0                                 # static Python bool

    if not need_mask:
        # Fast path only: no padded vocab columns anywhere.
        accumulate(x, x)

        @pl.when(k == nk - 1)
        def _():
            finalize()
    else:
        # Full chunks: mask-free fast path.
        @pl.when(k < nk - 1)
        def _():
            accumulate(x, x)

        # Last chunk: mask the padded columns (static remainder), then finalize.
        @pl.when(k == nk - 1)
        def _():
            rem = vocab % tv
            valid = jax.lax.broadcasted_iota(jnp.int32, (1, tv), 1) < rem
            x_masked = jnp.where(valid, x, -jnp.inf)
            accumulate(x_masked, jnp.where(valid, x, 0.0))
            finalize()


def smooth_cross_entropy_loss(logits, target, smoothing=0.0, *,
                              row_tile=256, max_vocab_tile=4096):
    """logits: [..., V] float (f32 or bf16), target: [...] int -> (loss, nll)."""
    # TODO(synk): the reference module has no ignore_index; add row masking here if
    # padding tokens must be ignored.
    orig_shape = target.shape
    V = int(logits.shape[-1])
    N = int(math.prod(orig_shape)) if orig_shape else 1

    logits2d = logits.reshape(N, V)
    tgt2d = target.reshape(N, 1).astype(jnp.int32)
    # Hoisted target-logit gather (touches only N of the N*V streamed elements).
    picked = jnp.take_along_axis(logits2d, tgt2d, axis=-1).astype(jnp.float32)

    # Row tile: multiple of 16 (bf16 sublane packing), capped at row_tile.  Ensure
    # the "parallel" row axis has >= 2 tiles when possible (v7x has 2 TensorCores).
    tm = _round_up(min(int(row_tile), _round_up(N, 16)), 16)
    n_pad = _round_up(N, tm)
    if n_pad // tm < 2 and n_pad >= 32:
        tm = _round_up((n_pad + 1) // 2, 16)
        n_pad = _round_up(N, tm)

    # Vocab tile: lane-dense multiple of 128, streamed along the last grid axis.
    tv = _round_up(min(int(max_vocab_tile), _round_up(V, 128)), 128)
    v_pad = _round_up(V, tv)

    if n_pad != N or v_pad != V:
        logits2d = jnp.pad(logits2d, ((0, n_pad - N), (0, v_pad - V)))
    if n_pad != N:
        picked = jnp.pad(picked, ((0, n_pad - N), (0, 0)))

    grid = (n_pad // tm, v_pad // tv)

    # VMEM budget: ~3x the double-buffered logits block + headroom, capped at 48 MiB
    # (v7x has only 64 MiB physical VMEM per TensorCore).
    in_block_bytes = tm * tv * logits2d.dtype.itemsize
    vmem_limit = int(min(6 * in_block_bytes + (4 << 20), 48 << 20))

    kernel = functools.partial(_smooth_ce_kernel,
                               smoothing=float(smoothing),
                               vocab=V, tv=tv)

    out = pl.pallas_call(
        kernel,
        out_shape=jax.ShapeDtypeStruct((n_pad, 2), jnp.float32),
        grid_spec=pltpu.PrefetchScalarGridSpec(
            num_scalar_prefetch=0,
            grid=grid,
            in_specs=[
                pl.BlockSpec((tm, tv), lambda i, k: (i, k)),
                pl.BlockSpec((tm, 1), lambda i, k: (i, 0)),
            ],
            out_specs=pl.BlockSpec((tm, 2), lambda i, k: (i, 0)),
            scratch_shapes=[pltpu.VMEM((tm, 1), jnp.float32)] * 3,
        ),
        compiler_params=pltpu.CompilerParams(
            dimension_semantics=("parallel", "arbitrary"),
            vmem_limit_bytes=vmem_limit,
        ),
    )(logits2d, picked)

    loss = out[:N, 0].reshape(orig_shape)
    nll = out[:N, 1].reshape(orig_shape)
    return loss, nll


def _reference(logits, target, smoothing=0.0):
    lprobs = jax.nn.log_softmax(logits.astype(jnp.float32), axis=-1)
    nll = -jnp.take_along_axis(lprobs, target[..., None], axis=-1)[..., 0]
    smooth = -jnp.sum(lprobs, axis=-1)
    eps_i = smoothing / logits.shape[-1]
    return (1.0 - smoothing) * nll + eps_i * smooth, nll


if __name__ == "__main__":
    key = jax.random.PRNGKey(0)
    k1, k2 = jax.random.split(key)
    smoothing = 0.1

    # --- primary demo: f32, small shapes consistent with the module -----------
    B, S, V = 2, 8, 32
    logits = jax.random.normal(k1, (B, S, V), dtype=jnp.float32)
    target = jax.random.randint(k2, (B, S), 0, V, dtype=jnp.int32)

    loss, nll = smooth_cross_entropy_loss(logits, target, smoothing)
    loss, nll = jax.block_until_ready((loss, nll))
    ref_loss, ref_nll = _reference(logits, target, smoothing)
    assert jnp.allclose(loss, ref_loss, atol=1e-5, rtol=1e-5)
    assert jnp.allclose(nll, ref_nll, atol=1e-5, rtol=1e-5)

    # --- bf16 logits (halves HBM traffic; math stays f32 inside the kernel) ---
    logits_bf16 = logits.astype(jnp.bfloat16)
    loss_b, nll_b = smooth_cross_entropy_loss(logits_bf16, target, smoothing)
    loss_b, nll_b = jax.block_until_ready((loss_b, nll_b))
    ref_loss_b, ref_nll_b = _reference(logits_bf16, target, smoothing)
    assert jnp.allclose(loss_b, ref_loss_b, atol=1e-4, rtol=1e-4)
    assert jnp.allclose(nll_b, ref_nll_b, atol=1e-4, rtol=1e-4)

    # --- ragged shapes: exercises row/col padding, multi-row-tile split, and
    #     the streamed-vocab path with a masked final chunk ---------------------
    B2, S2, V2 = 2, 12, 300
    l2 = jax.random.normal(k1, (B2, S2, V2), dtype=jnp.float32)
    t2 = jax.random.randint(k2, (B2, S2), 0, V2, dtype=jnp.int32)
    loss2, nll2 = smooth_cross_entropy_loss(l2, t2, smoothing, max_vocab_tile=128)
    loss2, nll2 = jax.block_until_ready((loss2, nll2))
    ref_loss2, ref_nll2 = _reference(l2, t2, smoothing)
    assert jnp.allclose(loss2, ref_loss2, atol=1e-4, rtol=1e-4)
    assert jnp.allclose(nll2, ref_nll2, atol=1e-4, rtol=1e-4)

    print("KERNEL_OK")
</pallas_src>

<mosaic_0001>
module attributes {stable_mosaic.version = 11 : i64} {
  func.func @_smooth_ce_kernel(%arg0: i32, %arg1: i32, %arg2: memref<16x128xf32, #tpu.memory_space<vmem>>, %arg3: memref<16x1xf32, #tpu.memory_space<vmem>>, %arg4: memref<16x2xf32, #tpu.memory_space<vmem>>, %arg5: memref<16x1xf32, #tpu.memory_space<vmem>>, %arg6: memref<16x1xf32, #tpu.memory_space<vmem>>, %arg7: memref<16x1xf32, #tpu.memory_space<vmem>>) attributes {dimension_semantics = [#tpu.dimension_semantics<parallel>, #tpu.dimension_semantics<arbitrary>], iteration_bounds = array<i64: 1, 1>, scalar_prefetch = 0 : i64, scratch_operands = 3 : i64, tpu.core_type = #tpu.core_type<tc>, window_params = [{transform_indices = @transform_0, window_bounds = array<i64: 16, 128>}, {transform_indices = @transform_1, window_bounds = array<i64: 16, 1>}, {transform_indices = @transform_2, window_bounds = array<i64: 16, 2>}]} {
    %c0_i32 = arith.constant 0 : i32
    %0 = arith.cmpi eq, %arg1, %c0_i32 : i32
    %1 = arith.extui %0 : i1 to i32
    %c0_i32_0 = arith.constant 0 : i32
    %2 = arith.cmpi ne, %1, %c0_i32_0 : i32
    scf.if %2 {
      %cst = arith.constant 0xFF800000 : f32
      %10 = vector.broadcast %cst : f32 to vector<16x1xf32>
      %c0_6 = arith.constant 0 : index
      %c0_7 = arith.constant 0 : index
      %11 = vector.load %arg5[%c0_6, %c0_7] : memref<16x1xf32, #tpu.memory_space<vmem>>, vector<16x1xf32>
      tpu.vector_store %arg5[%c0_6, %c0_7], %10 {strides = array<i32>} : memref<16x1xf32, #tpu.memory_space<vmem>>, vector<16x1xf32>,
      %cst_8 = arith.constant 0.000000e+00 : f32
      %12 = vector.broadcast %cst_8 : f32 to vector<16x1xf32>
      %c0_9 = arith.constant 0 : index
      %c0_10 = arith.constant 0 : index
      %13 = vector.load %arg6[%c0_9, %c0_10] : memref<16x1xf32, #tpu.memory_space<vmem>>, vector<16x1xf32>
      tpu.vector_store %arg6[%c0_9, %c0_10], %12 {strides = array<i32>} : memref<16x1xf32, #tpu.memory_space<vmem>>, vector<16x1xf32>,
      %cst_11 = arith.constant 0.000000e+00 : f32
      %14 = vector.broadcast %cst_11 : f32 to vector<16x1xf32>
      %c0_12 = arith.constant 0 : index
      %c0_13 = arith.constant 0 : index
      %15 = vector.load %arg7[%c0_12, %c0_13] : memref<16x1xf32, #tpu.memory_space<vmem>>, vector<16x1xf32>
      tpu.vector_store %arg7[%c0_12, %c0_13], %14 {strides = array<i32>} : memref<16x1xf32, #tpu.memory_space<vmem>>, vector<16x1xf32>,
    } else {
    }
    %c0 = arith.constant 0 : index
    %c0_1 = arith.constant 0 : index
    %3 = vector.load %arg2[%c0, %c0_1] : memref<16x128xf32, #tpu.memory_space<vmem>>, vector<16x128xf32>
    %c0_i32_2 = arith.constant 0 : i32
    %4 = arith.cmpi slt, %arg1, %c0_i32_2 : i32
    %5 = arith.extui %4 : i1 to i32
    %c0_i32_3 = arith.constant 0 : i32
    %6 = arith.cmpi ne, %5, %c0_i32_3 : i32
    scf.if %6 {
      %c0_6 = arith.constant 0 : index
      %c0_7 = arith.constant 0 : index
      %10 = vector.load %arg5[%c0_6, %c0_7] : memref<16x1xf32, #tpu.memory_space<vmem>>, vector<16x1xf32>
      %cst = arith.constant dense<0xFF800000> : vector<16xf32>
      %11 = vector.multi_reduction <maximumf>, %3, %cst [1] : vector<16x128xf32> to vector<16xf32>
      %12 = vector.shape_cast %11 : vector<16xf32> to vector<16x1xf32>
      %13 = arith.maximumf %10, %12 : vector<16x1xf32>
      %14 = arith.subf %10, %13 : vector<16x1xf32>
      %15 = math.exp %14 : vector<16x1xf32>
      %16 = vector.broadcast %13 : vector<16x1xf32> to vector<16x128xf32>
      %17 = arith.subf %3, %16 : vector<16x128xf32>
      %18 = math.exp %17 : vector<16x128xf32>
      %c0_8 = arith.constant 0 : index
      %c0_9 = arith.constant 0 : index
      %19 = vector.load %arg6[%c0_8, %c0_9] : memref<16x1xf32, #tpu.memory_space<vmem>>, vector<16x1xf32>
      %20 = arith.mulf %15, %19 : vector<16x1xf32>
      %cst_10 = arith.constant dense<0.000000e+00> : vector<16xf32>
      %21 = vector.multi_reduction <add>, %18, %cst_10 [1] : vector<16x128xf32> to vector<16xf32>
      %22 = vector.shape_cast %21 : vector<16xf32> to vector<16x1xf32>
      %23 = arith.addf %20, %22 : vector<16x1xf32>
      %c0_11 = arith.constant 0 : index
      %c0_12 = arith.constant 0 : index
      %24 = vector.load %arg6[%c0_11, %c0_12] : memref<16x1xf32, #tpu.memory_space<vmem>>, vector<16x1xf32>
      tpu.vector_store %arg6[%c0_11, %c0_12], %23 {strides = array<i32>} : memref<16x1xf32, #tpu.memory_space<vmem>>, vector<16x1xf32>,
      %c0_13 = arith.constant 0 : index
      %c0_14 = arith.constant 0 : index
      %25 = vector.load %arg7[%c0_13, %c0_14] : memref<16x1xf32, #tpu.memory_space<vmem>>, vector<16x1xf32>
      %cst_15 = arith.constant dense<0.000000e+00> : vector<16xf32>
      %26 = vector.multi_reduction <add>, %3, %cst_15 [1] : vector<16x128xf32> to vector<16xf32>
      %27 = vector.shape_cast %26 : vector<16xf32> to vector<16x1xf32>
      %28 = arith.addf %25, %27 : vector<16x1xf32>
      %c0_16 = arith.constant 0 : index
      %c0_17 = arith.constant 0 : index
      %29 = vector.load %arg7[%c0_16, %c0_17] : memref<16x1xf32, #tpu.memory_space<vmem>>, vector<16x1xf32>
      tpu.vector_store %arg7[%c0_16, %c0_17], %28 {strides = array<i32>} : memref<16x1xf32, #tpu.memory_space<vmem>>, vector<16x1xf32>,
      %c0_18 = arith.constant 0 : index
      %c0_19 = arith.constant 0 : index
      %30 = vector.load %arg5[%c0_18, %c0_19] : memref<16x1xf32, #tpu.memory_space<vmem>>, vector<16x1xf32>
      tpu.vector_store %arg5[%c0_18, %c0_19], %13 {strides = array<i32>} : memref<16x1xf32, #tpu.memory_space<vmem>>, vector<16x1xf32>,
    } else {
    }
    %c0_i32_4 = arith.constant 0 : i32
    %7 = arith.cmpi eq, %arg1, %c0_i32_4 : i32
    %8 = arith.extui %7 : i1 to i32
    %c0_i32_5 = arith.constant 0 : i32
    %9 = arith.cmpi ne, %8, %c0_i32_5 : i32
    scf.if %9 {
      %10 = tpu.iota {dimensions = array<i32: 1>} : vector<1x128xi32>
      %c32_i32 = arith.constant 32 : i32
      %11 = vector.broadcast %c32_i32 : i32 to vector<1x128xi32>
      %12 = arith.cmpi slt, %10, %11 : vector<1x128xi32>
      %cst = arith.constant 0xFF800000 : f32
      %13 = vector.shape_cast %12 : vector<1x128xi1> to vector<1x128xi1>
      %14 = vector.broadcast %13 : vector<1x128xi1> to vector<16x128xi1>
      %15 = vector.broadcast %cst : f32 to vector<16x128xf32>
      %16 = arith.select %14, %3, %15 : vector<16x128xi1>, vector<16x128xf32>
      %cst_6 = arith.constant 0.000000e+00 : f32
      %17 = vector.shape_cast %12 : vector<1x128xi1> to vector<1x128xi1>
      %18 = vector.broadcast %17 : vector<1x128xi1> to vector<16x128xi1>
      %19 = vector.broadcast %cst_6 : f32 to vector<16x128xf32>
      %20 = arith.select %18, %3, %19 : vector<16x128xi1>, vector<16x128xf32>
      %c0_7 = arith.constant 0 : index
      %c0_8 = arith.constant 0 : index
      %21 = vector.load %arg5[%c0_7, %c0_8] : memref<16x1xf32, #tpu.memory_space<vmem>>, vector<16x1xf32>
      %cst_9 = arith.constant dense<0xFF800000> : vector<16xf32>
      %22 = vector.multi_reduction <maximumf>, %16, %cst_9 [1] : vector<16x128xf32> to vector<16xf32>
      %23 = vector.shape_cast %22 : vector<16xf32> to vector<16x1xf32>
      %24 = arith.maximumf %21, %23 : vector<16x1xf32>
      %25 = arith.subf %21, %24 : vector<16x1xf32>
      %26 = math.exp %25 : vector<16x1xf32>
      %27 = vector.broadcast %24 : vector<16x1xf32> to vector<16x128xf32>
      %28 = arith.subf %16, %27 : vector<16x128xf32>
      %29 = math.exp %28 : vector<16x128xf32>
      %c0_10 = arith.constant 0 : index
      %c0_11 = arith.constant 0 : index
      %30 = vector.load %arg6[%c0_10, %c0_11] : memref<16x1xf32, #tpu.memory_space<vmem>>, vector<16x1xf32>
      %31 = arith.mulf %26, %30 : vector<16x1xf32>
      %cst_12 = arith.constant dense<0.000000e+00> : vector<16xf32>
      %32 = vector.multi_reduction <add>, %29, %cst_12 [1] : vector<16x128xf32> to vector<16xf32>
      %33 = vector.shape_cast %32 : vector<16xf32> to vector<16x1xf32>
      %34 = arith.addf %31, %33 : vector<16x1xf32>
      %c0_13 = arith.constant 0 : index
      %c0_14 = arith.constant 0 : index
      %35 = vector.load %arg6[%c0_13, %c0_14] : memref<16x1xf32, #tpu.memory_space<vmem>>, vector<16x1xf32>
      tpu.vector_store %arg6[%c0_13, %c0_14], %34 {strides = array<i32>} : memref<16x1xf32, #tpu.memory_space<vmem>>, vector<16x1xf32>,
      %c0_15 = arith.constant 0 : index
      %c0_16 = arith.constant 0 : index
      %36 = vector.load %arg7[%c0_15, %c0_16] : memref<16x1xf32, #tpu.memory_space<vmem>>, vector<16x1xf32>
      %cst_17 = arith.constant dense<0.000000e+00> : vector<16xf32>
      %37 = vector.multi_reduction <add>, %20, %cst_17 [1] : vector<16x128xf32> to vector<16xf32>
      %38 = vector.shape_cast %37 : vector<16xf32> to vector<16x1xf32>
      %39 = arith.addf %36, %38 : vector<16x1xf32>
      %c0_18 = arith.constant 0 : index
      %c0_19 = arith.constant 0 : index
      %40 = vector.load %arg7[%c0_18, %c0_19] : memref<16x1xf32, #tpu.memory_space<vmem>>, vector<16x1xf32>
      tpu.vector_store %arg7[%c0_18, %c0_19], %39 {strides = array<i32>} : memref<16x1xf32, #tpu.memory_space<vmem>>, vector<16x1xf32>,
      %c0_20 = arith.constant 0 : index
      %c0_21 = arith.constant 0 : index
      %41 = vector.load %arg5[%c0_20, %c0_21] : memref<16x1xf32, #tpu.memory_space<vmem>>, vector<16x1xf32>
      tpu.vector_store %arg5[%c0_20, %c0_21], %24 {strides = array<i32>} : memref<16x1xf32, #tpu.memory_space<vmem>>, vector<16x1xf32>,
      %c0_22 = arith.constant 0 : index
      %c0_23 = arith.constant 0 : index
      %42 = vector.load %arg5[%c0_22, %c0_23] : memref<16x1xf32, #tpu.memory_space<vmem>>, vector<16x1xf32>
      %c0_24 = arith.constant 0 : index
      %c0_25 = arith.constant 0 : index
      %43 = vector.load %arg6[%c0_24, %c0_25] : memref<16x1xf32, #tpu.memory_space<vmem>>, vector<16x1xf32>
      %44 = math.log %43 : vector<16x1xf32>
      %45 = arith.addf %42, %44 : vector<16x1xf32>
      %c0_26 = arith.constant 0 : index
      %c0_27 = arith.constant 0 : index
      %46 = vector.load %arg3[%c0_26, %c0_27] : memref<16x1xf32, #tpu.memory_space<vmem>>, vector<16x1xf32>
      %47 = arith.subf %45, %46 : vector<16x1xf32>
      %cst_28 = arith.constant 3.200000e+01 : f32
      %48 = vector.broadcast %cst_28 : f32 to vector<16x1xf32>
      %49 = arith.mulf %48, %45 : vector<16x1xf32>
      %c0_29 = arith.constant 0 : index
      %c0_30 = arith.constant 0 : index
      %50 = vector.load %arg7[%c0_29, %c0_30] : memref<16x1xf32, #tpu.memory_space<vmem>>, vector<16x1xf32>
      %51 = arith.subf %49, %50 : vector<16x1xf32>
      %cst_31 = arith.constant 0.899999976 : f32
      %52 = vector.broadcast %cst_31 : f32 to vector<16x1xf32>
      %53 = arith.mulf %52, %47 : vector<16x1xf32>
      %cst_32 = arith.constant 3.125000e-03 : f32
      %54 = vector.broadcast %cst_32 : f32 to vector<16x1xf32>
      %55 = arith.mulf %54, %51 : vector<16x1xf32>
      %56 = arith.addf %53, %55 : vector<16x1xf32>
      %57 = tpu.iota {dimensions = array<i32: 1>} : vector<16x2xi32>
      %c0_i32_33 = arith.constant 0 : i32
      %58 = vector.broadcast %c0_i32_33 : i32 to vector<16x2xi32>
      %59 = arith.cmpi eq, %57, %58 : vector<16x2xi32>
      %60 = vector.shape_cast %56 : vector<16x1xf32> to vector<16x1xf32>
      %61 = vector.broadcast %60 : vector<16x1xf32> to vector<16x2xf32>
      %62 = vector.shape_cast %47 : vector<16x1xf32> to vector<16x1xf32>
      %63 = vector.broadcast %62 : vector<16x1xf32> to vector<16x2xf32>
      %64 = arith.select %59, %61, %63 : vector<16x2xi1>, vector<16x2xf32>
      %c0_34 = arith.constant 0 : index
      %c0_35 = arith.constant 0 : index
      %65 = vector.load %arg4[%c0_34, %c0_35] : memref<16x2xf32, #tpu.memory_space<vmem>>, vector<16x2xf32>
      tpu.vector_store %arg4[%c0_34, %c0_35], %64 {strides = array<i32>} : memref<16x2xf32, #tpu.memory_space<vmem>>, vector<16x2xf32>,
    } else {
    }
    return
  }
  func.func @transform_0(%arg0: i32, %arg1: i32) -> (i32, i32) {
    %c0_i32 = arith.constant 0 : i32
    return %arg0, %arg1 : i32, i32
  }
  func.func @transform_1(%arg0: i32, %arg1: i32) -> (i32, i32) {
    %c0_i32 = arith.constant 0 : i32
    %c0_i32_0 = arith.constant 0 : i32
    return %arg0, %c0_i32 : i32, i32
  }
  func.func @transform_2(%arg0: i32, %arg1: i32) -> (i32, i32) {
    %c0_i32 = arith.constant 0 : i32
    %c0_i32_0 = arith.constant 0 : i32
    return %arg0, %c0_i32 : i32, i32
  }
}

</mosaic_0001>

<bundles_post_ra>
// kernel: tpu_custom_call.1
= control target key start
LH: loop header
LB: loop body
LE: loop exit
PB: predicated region body
PF: predicated region fallthrough
CT: control target
= control target key end

     0   :  { %v86_v0 = vlaneseq  ;;  %vm15_vm0 = vcmask 7168   ;;  %v224_v1 = vmov -inf   ;;  %v225_v7 = vmov 0   ;;  %s284_s0 = inlined_call_operand.vmem [shape: f32[16,128], index: 0, kind: input, shape index: {}]   ;;  %s285_s1 = inlined_call_operand.vmem [shape: f32[16,1], index: 1, kind: input, shape index: {}]   ;;  %s286_s2 = inlined_call_operand.vmem [shape: f32[16,2], index: 2, kind: output, shape index: {}]  }
   0x1   :  { %16 = vst.msk [vmem:[#allocation2] sm:$0xff] %vm15_vm0, %v224_v1  ;;  %v22_v2 = vld [vmem:[%s284_s0] sm:$0xff]  ;;  %v23_v5 = vld [vmem:[%s284_s0 + $0x8] sm:$0xff]  ;;  %209 = vset.pattern.permute.xlu1 %v225_v7  ;;  %210 = vset.pattern.permute.xlu2 %v225_v7  ;;  %v226_v8 = vmov 0.0   ;;  %vm199_vm3 = vcmask 15360  }
   0x2   :  { %v246_v3 = vand.u32 127, %v86_v0  ;;  %17 = vst.msk [vmem:[#allocation2 + $0x8] sm:$0xff] %vm15_vm0, %v224_v1  ;;  %211 = vset.pattern.permute.xlu0 %v225_v7  ;;  %v160_v50 = vld [vmem:[%s285_s1] sm:$0xff]  ;;  %v161_v61 = vld [vmem:[%s285_s1 + $0x8] sm:$0xff] }
   0x3   :  { %18 = vst.msk [vmem:[#allocation3] sm:$0xff] %vm15_vm0, %v226_v8 }
   0x4   :  { %vm88_vm1 = vcmp.lt.s32.totalorder %v246_v3, 32  ;;  %19 = vst.msk [vmem:[#allocation3 + $0x8] sm:$0xff] %vm15_vm0, %v226_v8  ;;  %vm176_vm2 = vcmp.eq.s32.totalorder %v246_v3, 0 }
   0x5   :  { %v91_v4 = vsel %vm88_vm1, %v22_v2, -inf  ;;  %v92_v6 = vsel %vm88_vm1, %v23_v5, -inf  ;;  %20 = vst.msk [vmem:[#allocation4] sm:$0xff] %vm15_vm0, %v226_v8  ;;  %v93_v17 = vsel %vm88_vm1, %v22_v2, 0.0  ;;  %v94_v18 = vsel %vm88_vm1, %v23_v5, 0.0 }
   0x6   :  { %97 = vmax.xlane.f32.xlu0 %v91_v4  ;;  %21 = vst.msk [vmem:[#allocation4 + $0x8] sm:$0xff] %vm15_vm0, %v226_v8 }
   0x8   :  { %v95_v9 = vld [vmem:[#allocation2] sm:$0xff] }
   0x9   :  { %v96_v13 = vld [vmem:[#allocation2 + $0x8] sm:$0xff] }
   0xa   :  { %v125_v36 = vld [vmem:[#allocation3] sm:$0xff] }
   0xb   :  { %v126_v41 = vld [vmem:[#allocation3 + $0x8] sm:$0xff] }
   0xc   :  { %v138_v27 = vld [vmem:[#allocation4] sm:$0xff] }
   0xd   :  { %v139_v29 = vld [vmem:[#allocation4 + $0x8] sm:$0xff] }
   0xe   :  { %99 = vmax.xlane.f32.xlu0 %v92_v6 }
  0x16   :  { %140 = vadd.xlane.f32.xlu0 %v93_v17 }
  0x79   :  { %v98_v10 = vpop.xlane.xlu0 %97 }
  0x7a   :  { %v101_v11 = vmax.f32 %v95_v9, %v98_v10 }
  0x7c   :  { %v103_v12 = vsub.f32 %v95_v9, %v101_v11  ;;  %148 = vst.msk [vmem:[#allocation2] sm:$0xff] %vm15_vm0, %v101_v11  ;;  %111 = vperm.xlu1 %209, %v101_v11  }
  0x7e   :  { %v105_v33 = vmul.f32 1.442695, %v103_v12 }
  0x81   :  { %v100_v14 = vpop.xlane.xlu0 %99 }
  0x82   :  { %v102_v15 = vmax.f32 %v96_v13, %v100_v14 }
  0x83   :  { %v150_v49 = vld [vmem:[#allocation2] sm:$0xff] }
  0x84   :  { %v104_v16 = vsub.f32 %v96_v13, %v102_v15  ;;  %149 = vst.msk [vmem:[#allocation2 + $0x8] sm:$0xff] %vm15_vm0, %v102_v15  ;;  %116 = vperm.xlu1 %209, %v102_v15  }
  0x86   :  { %v107_v34 = vmul.f32 1.442695, %v104_v16 }
  0x89   :  { %v141_v28 = vpop.xlane.xlu0 %140 }
  0x8a   :  { %v144_v31 = vadd.f32 %v141_v28, %v138_v27 }
  0x8b   :  { %v151_v60 = vld [vmem:[#allocation2 + $0x8] sm:$0xff] }
  0x8c   :  { %146 = vst.msk [vmem:[#allocation4] sm:$0xff] %vm15_vm0, %v144_v31 }
  0x93   :  { %v166_v52 = vld [vmem:[#allocation4] sm:$0xff] }
  0xae   :  { %142 = vadd.xlane.f32.xlu1 %v94_v18 }
  0xee   :  { %v112_v19 = vpop.permute.xlu1 %111 }
  0xef   :  { %v119_v20 = vsub.f32 %v91_v4, %v112_v19 }
  0xf1   :  { %v121_v21 = vmul.f32 1.442695, %v119_v20 }
  0xf3   :  { %212 = vpow2.f32 %v121_v21 }
  0xf6   :  { %v117_v22 = vpop.permute.xlu1 %116 }
  0xf7   :  { %v120_v23 = vsub.f32 %v92_v6, %v117_v22 }
  0xf9   :  { %v213_v24 = vpop.eup %212  ;;  %v123_v25 = vmul.f32 1.442695, %v120_v23 }
  0xfa   :  { %129 = vadd.xlane.f32.xlu2 %v213_v24 }
  0xfb   :  { %214 = vpow2.f32 %v123_v25 }
  0xfc   :  { %216 = vpow2.f32 %v105_v33 }
  0xfd   :  { %218 = vpow2.f32 %v107_v34 }
 0x101   :  { %v215_v26 = vpop.eup %214 }
 0x102   :  { %131 = vadd.xlane.f32.xlu2 %v215_v26  ;;  %v217_v35 = vpop.eup %216 }
 0x103   :  { %v127_v37 = vmul.f32 %v217_v35, %v125_v36  ;;  %v219_v40 = vpop.eup %218 }
 0x104   :  { %v128_v42 = vmul.f32 %v219_v40, %v126_v41 }
 0x121   :  { %v143_v30 = vpop.xlane.xlu1 %142 }
 0x122   :  { %v145_v32 = vadd.f32 %v143_v30, %v139_v29 }
 0x124   :  { %147 = vst.msk [vmem:[#allocation4 + $0x8] sm:$0xff] %vm15_vm0, %v145_v32 }
 0x12b   :  { %v167_v0 = vld [vmem:[#allocation4 + $0x8] sm:$0xff] }
 0x16d   :  { %v130_v38 = vpop.xlane.xlu2 %129 }
 0x16e   :  { %v133_v39 = vadd.f32 %v130_v38, %v127_v37 }
 0x170   :  { %136 = vst.msk [vmem:[#allocation3] sm:$0xff] %vm15_vm0, %v133_v39 }
 0x175   :  { %v132_v43 = vpop.xlane.xlu2 %131 }
 0x176   :  { %v134_v44 = vadd.f32 %v132_v43, %v128_v42 }
 0x177   :  { %v152_v45 = vld [vmem:[#allocation3] sm:$0xff] }
 0x178   :  { %137 = vst.msk [vmem:[#allocation3 + $0x8] sm:$0xff] %vm15_vm0, %v134_v44  ;;  %220 = vlog2.f32 %v152_v45 }
 0x17e   :  { %v221_v46 = vpop.eup %220 }
 0x17f   :  { %v155_v47 = vmul.f32 0.6931472, %v221_v46  ;;  %v153_v48 = vld [vmem:[#allocation3 + $0x8] sm:$0xff] }
 0x180   :  { %222 = vlog2.f32 %v153_v48 }
 0x181   :  { %v158_v51 = vadd.f32 %v155_v47, %v150_v49 }
 0x183   :  { %v162_v53 = vsub.f32 %v158_v51, %v160_v50  ;;  %v164_v54 = vmul.f32 32.0, %v158_v51 }
 0x185   :  { %v168_v55 = vsub.f32 %v164_v54, %v166_v52  ;;  %v170_v57 = vmul.f32 0.9, %v162_v53 }
 0x186   :  { %v223_v56 = vpop.eup %222 }
 0x187   :  { %v172_v58 = vmul.f32 0.003125, %v168_v55  ;;  %v157_v59 = vmul.f32 0.6931472, %v223_v56 }
 0x189   :  { %v174_v62 = vadd.f32 %v172_v58, %v170_v57  ;;  %v159_v63 = vadd.f32 %v157_v59, %v151_v60 }
 0x18b   :  { %179 = vperm.xlu2 %210, %v174_v62   ;;  %v163_v1 = vsub.f32 %v159_v63, %v161_v61  ;;  %v165_v2 = vmul.f32 32.0, %v159_v63 }
 0x18d   :  { %v169_v4 = vsub.f32 %v165_v2, %v167_v0  ;;  %v171_v5 = vmul.f32 0.9, %v163_v1 }
 0x18f   :  { %v173_v6 = vmul.f32 0.003125, %v169_v4 }
 0x191   :  { %v175_v7 = vadd.f32 %v173_v6, %v171_v5 }
 0x193   :  { %184 = vperm.xlu0 %211, %v175_v7   ;;  %189 = vperm.xlu2 %210, %v162_v53  }
 0x19b   :  { %194 = vperm.xlu2 %210, %v163_v1  }
 0x1e5   :  { %v180_v8 = vpop.permute.xlu2 %179 }
 0x1ed   :  { %v190_v9 = vpop.permute.xlu2 %189 }
 0x1ee   :  { %v197_v10 = vsel %vm176_vm2, %v180_v8, %v190_v9 }
 0x1ef   :  { %200 = vst.msk [vmem:[%s286_s2] sm:$0xff] %vm199_vm3, %v197_v10 }
 0x1f5   :  { %v195_v11 = vpop.permute.xlu2 %194 }
 0x205   :  { %v185_v12 = vpop.permute.xlu0 %184 }
 0x206   :  { %v198_v13 = vsel %vm176_vm2, %v185_v12, %v195_v11 }
 0x207   :  { %201 = vst.msk [vmem:[%s286_s2 + $0x8] sm:$0xff] %vm199_vm3, %v198_v13 }

</bundles_post_ra>
